<compile_context>
chip_gen: v6e
topology: v6e:2x2x1
jax: 0.10.0
libtpu: 0.0.40
codegen_flags: <defaults>
</compile_context>

<pallas_src>
import functools

import jax
import jax.numpy as jnp
from jax.experimental import pallas as pl
from jax.experimental.pallas import tpu as pltpu

_LANE = 128    # lane width (last-dim tiling)
_SUBLANE = 8   # f32 sublane tiling (second-to-last dim)
_WEIGHT_TILE_BUDGET = 8 * 2**20  # per-step streamed weight-slice / x-tile byte budget


def _round_up(x: int, m: int) -> int:
    return ((x + m - 1) // m) * m


def _body(x_ref, w1_ref, b1_ref, w2_ref, b2_ref, out_ref, acc_ref, h_ref):
    """Grid: (batch tile i, hidden tile j). Layer 2 accumulates over j."""
    j = pl.program_id(1)

    @pl.when(j == 0)
    def _():
        acc_ref[...] = jnp.zeros_like(acc_ref)

    # Layer 1: h = x @ W1 + b1. Cast the LHS to the weight dtype so the bf16 config
    # hits the native bf16 MXU path (no-op for f32 weights). Accumulate in f32.
    x = x_ref[...].astype(w1_ref.dtype)
    h = jnp.dot(x, w1_ref[...], preferred_element_type=jnp.float32) + b1_ref[...]
    if h_ref is not None:
        h_ref[...] = h.astype(h_ref.dtype)

    # Layer 2 partial product for this D_h slice, accumulated in f32 VMEM scratch.
    acc_ref[...] += jnp.dot(h.astype(w2_ref.dtype), w2_ref[...],
                            preferred_element_type=jnp.float32)

    @pl.when(j == pl.num_programs(1) - 1)
    def _():
        out_ref[...] = (acc_ref[...] + b2_ref[...]).astype(out_ref.dtype)


def _kernel_with_h(x_ref, w1_ref, b1_ref, w2_ref, b2_ref, h_ref, out_ref, acc_ref):
    _body(x_ref, w1_ref, b1_ref, w2_ref, b2_ref, out_ref, acc_ref, h_ref)


def _kernel_no_h(x_ref, w1_ref, b1_ref, w2_ref, b2_ref, out_ref, acc_ref):
    _body(x_ref, w1_ref, b1_ref, w2_ref, b2_ref, out_ref, acc_ref, None)


def _vmem_physical_bytes() -> int:
    """Per-TensorCore physical VMEM; conservative (v7x) fallback if unavailable."""
    try:
        info = pltpu.get_tpu_info()
        cap = getattr(info, "vmem_capacity_bytes", None)
        if cap:
            return int(cap)
    except Exception:
        pass
    return 64 * 2**20


@functools.partial(
    jax.jit, static_argnames=("batch_tile", "weight_dtype", "include_hidden"))
def net_forward(x, w1, b1, w2, b2, *, batch_tile=512, weight_dtype=jnp.float32,
                include_hidden=True):
    """Pallas forward pass of the two-layer linear Net.

    x:  (B, D_in)    float32
    w1: (D_in, D_h)   (transpose of torch's fc_feature_to_hfeatures.weight)
    b1: (D_h,) or (1, D_h)
    w2: (D_h, D_out)  (transpose of torch's fc_hfeature_to_out.weight)
    b2: (D_out,) or (1, D_out)

    Returns (output, hidden) == (Net.forward(x), Net.get_activations(x)) when
    include_hidden=True, else just the output.

    The default f32 path matches the PyTorch reference to float rounding. With
    weight_dtype=bfloat16 both matmuls run on the bf16 MXU path (f32 accumulation),
    so results are approximate.
    """
    B, D_in = x.shape
    D_h = w1.shape[1]
    D_out = w2.shape[1]
    b1 = jnp.reshape(b1, (1, D_h))
    b2 = jnp.reshape(b2, (1, D_out))

    wdt = jnp.dtype(weight_dtype)
    wbytes = wdt.itemsize
    f32b = 4

    # ---- Batch tiling (second-to-last block dim: multiple of 8, or the full dim) ----
    if B <= _SUBLANE:
        tb = B  # full-extent block, no padding, grid=(1, ...)
    else:
        tb = _round_up(min(batch_tile, B), _SUBLANE)
        if B >= 2 * _SUBLANE:
            # At least 2 grid steps so v7x's second TensorCore gets work.
            tb = min(tb, _round_up(-(-B // 2), _SUBLANE))
        # Keep the streamed x tile modest even for very wide inputs.
        tb_cap = max(_SUBLANE,
                     (_WEIGHT_TILE_BUDGET // max(1, D_in * f32b)) // _SUBLANE * _SUBLANE)
        tb = max(_SUBLANE, min(tb, tb_cap))
    b_p = _round_up(B, tb)
    nb = b_p // tb

    # ---- Hidden-dim tiling: only when resident weight slices would be large ----
    full_w_bytes = (D_in + D_out) * D_h * wbytes
    if full_w_bytes <= _WEIGHT_TILE_BUDGET or D_h <= _LANE:
        th = D_h          # single slice: block == full D_h, no padding needed
        d_h_p = D_h
    else:
        per_col = (D_in + D_out) * wbytes
        th = max(_LANE, (_WEIGHT_TILE_BUDGET // per_col) // _LANE * _LANE)
        d_h_p = _round_up(D_h, th)
    n_h = d_h_p // th

    # ---- Zero-padding only where strictly required (batch tile / D_h tiling) ----
    xp = x.astype(jnp.float32)
    if b_p != B:
        xp = jnp.pad(xp, ((0, b_p - B), (0, 0)))
    w1p = w1.astype(wdt)
    b1p = b1.astype(jnp.float32)
    w2p = w2.astype(wdt)
    b2p = b2.astype(jnp.float32)
    if d_h_p != D_h:
        # Zero columns of W1 / zeros in b1 give zero hidden cols; zero rows of W2
        # contribute nothing to the accumulation -> results exact on valid region.
        w1p = jnp.pad(w1p, ((0, 0), (0, d_h_p - D_h)))
        b1p = jnp.pad(b1p, ((0, 0), (0, d_h_p - D_h)))
        w2p = jnp.pad(w2p, ((0, d_h_p - D_h), (0, 0)))

    grid = (nb, n_h)
    in_specs = [
        pl.BlockSpec((tb, D_in), lambda i, j: (i, 0)),    # x: tiled over batch
        pl.BlockSpec((D_in, th), lambda i, j: (0, j)),    # W1: streamed over D_h
        pl.BlockSpec((1, th), lambda i, j: (0, j)),       # b1: streamed over D_h
        pl.BlockSpec((th, D_out), lambda i, j: (j, 0)),   # W2: streamed over D_h
        pl.BlockSpec((1, D_out), lambda i, j: (0, 0)),    # b2: constant, reused
    ]
    out_spec_out = pl.BlockSpec((tb, D_out), lambda i, j: (i, 0))  # resident over j
    out_spec_h = pl.BlockSpec((tb, th), lambda i, j: (i, j))

    # ---- VMEM budget: 2x streamed blocks (double-buffered) + 1x scratch + headroom ----
    streamed = (tb * D_in * f32b
                + D_in * th * wbytes + th * f32b
                + th * D_out * wbytes + D_out * f32b
                + tb * D_out * f32b)
    if include_hidden:
        streamed += tb * th * f32b
    scratch_bytes = tb * D_out * f32b
    vmem_needed = 2 * streamed + scratch_bytes
    vmem_cap = int(_vmem_physical_bytes() * 0.85)   # headroom for Mosaic internal scratch
    vmem_limit = int(min(vmem_cap, max(32 * 2**20, vmem_needed + 8 * 2**20)))

    w_streams = nb if n_h > 1 else 1   # weights re-streamed per batch tile only if D_h-tiled
    cost = pl.CostEstimate(
        flops=2 * b_p * d_h_p * (D_in + D_out),
        transcendentals=0,
        bytes_accessed=(b_p * D_in * f32b
                        + w_streams * (D_in * d_h_p + d_h_p * D_out) * wbytes
                        + w_streams * d_h_p * f32b + D_out * f32b
                        + b_p * D_out * f32b
                        + (b_p * d_h_p * f32b if include_hidden else 0)),
    )

    compiler_params = pltpu.CompilerParams(
        dimension_semantics=("parallel", "arbitrary"),
        vmem_limit_bytes=vmem_limit,
    )
    scratch_shapes = [pltpu.VMEM((tb, D_out), jnp.float32)]

    if include_hidden:
        h_p, out_p = pl.pallas_call(
            _kernel_with_h,
            out_shape=(
                jax.ShapeDtypeStruct((b_p, d_h_p), jnp.float32),
                jax.ShapeDtypeStruct((b_p, D_out), jnp.float32),
            ),
            grid=grid,
            in_specs=in_specs,
            out_specs=(out_spec_h, out_spec_out),
            scratch_shapes=scratch_shapes,
            compiler_params=compiler_params,
            cost_estimate=cost,
        )(xp, w1p, b1p, w2p, b2p)
        out = out_p[:B, :] if b_p != B else out_p
        h = h_p[:B, :D_h] if (b_p != B or d_h_p != D_h) else h_p
        return out, h

    out_p = pl.pallas_call(
        _kernel_no_h,
        out_shape=jax.ShapeDtypeStruct((b_p, D_out), jnp.float32),
        grid=grid,
        in_specs=in_specs,
        out_specs=out_spec_out,
        scratch_shapes=scratch_shapes,
        compiler_params=compiler_params,
        cost_estimate=cost,
    )(xp, w1p, b1p, w2p, b2p)
    return out_p[:B, :] if b_p != B else out_p


def init_params(key, d_in, d_h, d_out):
    """Deterministic init mimicking nn.Linear's uniform(-1/sqrt(fan_in), 1/sqrt(fan_in))."""
    k1, k2, k3, k4 = jax.random.split(key, 4)
    bound1 = 1.0 / jnp.sqrt(d_in)
    bound2 = 1.0 / jnp.sqrt(d_h)
    w1 = jax.random.uniform(k1, (d_in, d_h), jnp.float32, -bound1, bound1)
    b1 = jax.random.uniform(k2, (1, d_h), jnp.float32, -bound1, bound1)
    w2 = jax.random.uniform(k3, (d_h, d_out), jnp.float32, -bound2, bound2)
    b2 = jax.random.uniform(k4, (1, d_out), jnp.float32, -bound2, bound2)
    return w1, b1, w2, b2


if __name__ == "__main__":
    key = jax.random.PRNGKey(0)

    # Case 1: small shapes consistent with Net(D_features_in=16, D_out=8, D_h_features=32).
    B, D_in, D_h, D_out = 8, 16, 32, 8
    k_x, k_p, k_x2, k_p2 = jax.random.split(key, 4)
    x = jax.random.normal(k_x, (B, D_in), jnp.float32)
    w1, b1, w2, b2 = init_params(k_p, D_in, D_h, D_out)

    out, h = net_forward(x, w1, b1, w2, b2)
    out = jax.block_until_ready(out)
    h = jax.block_until_ready(h)

    h_ref = x @ w1 + b1
    out_ref = h_ref @ w2 + b2
    assert out.shape == (B, D_out) and h.shape == (B, D_h)
    assert jnp.allclose(out, out_ref, atol=1e-5), "output mismatch"
    assert jnp.allclose(h, h_ref, atol=1e-5), "hidden activation mismatch"

    # Output-only path (no hidden-activation writeback).
    out_only = jax.block_until_ready(
        net_forward(x, w1, b1, w2, b2, include_hidden=False))
    assert jnp.allclose(out_only, out_ref, atol=1e-5), "output-only mismatch"

    # Case 2: ragged, non-aligned dims exercising the multi-step batch grid + padding.
    B2, D_in2, D_h2, D_out2 = 20, 24, 40, 12
    x2 = jax.random.normal(k_x2, (B2, D_in2), jnp.float32)
    w1b, b1b, w2b, b2b = init_params(k_p2, D_in2, D_h2, D_out2)
    out2, h2 = net_forward(x2, w1b, b1b, w2b, b2b)
    out2 = jax.block_until_ready(out2)
    h2 = jax.block_until_ready(h2)
    h2_ref = x2 @ w1b + b1b
    out2_ref = h2_ref @ w2b + b2b
    assert out2.shape == (B2, D_out2) and h2.shape == (B2, D_h2)
    assert jnp.allclose(out2, out2_ref, atol=1e-5), "case-2 output mismatch"
    assert jnp.allclose(h2, h2_ref, atol=1e-5), "case-2 hidden mismatch"

    print("KERNEL_OK")
</pallas_src>

<mosaic_0001>
module attributes {stable_mosaic.version = 11 : i64} {
  func.func @_kernel_with_h(%arg0: i32, %arg1: i32, %arg2: memref<8x16xf32, #tpu.memory_space<vmem>>, %arg3: memref<16x32xf32, #tpu.memory_space<vmem>>, %arg4: memref<1x32xf32, #tpu.memory_space<vmem>>, %arg5: memref<32x8xf32, #tpu.memory_space<vmem>>, %arg6: memref<1x8xf32, #tpu.memory_space<vmem>>, %arg7: memref<8x32xf32, #tpu.memory_space<vmem>>, %arg8: memref<8x8xf32, #tpu.memory_space<vmem>>, %arg9: memref<8x8xf32, #tpu.memory_space<vmem>>) attributes {dimension_semantics = [#tpu.dimension_semantics<parallel>, #tpu.dimension_semantics<arbitrary>], iteration_bounds = array<i64: 1, 1>, scalar_prefetch = 0 : i64, scratch_operands = 1 : i64, tpu.core_type = #tpu.core_type<tc>, window_params = [{transform_indices = @transform_0, window_bounds = array<i64: 8, 16>}, {transform_indices = @transform_1, window_bounds = array<i64: 16, 32>}, {transform_indices = @transform_2, window_bounds = array<i64: 1, 32>}, {transform_indices = @transform_3, window_bounds = array<i64: 32, 8>}, {pipeline_mode = #tpu.pipeline_mode<synchronous>, transform_indices = @transform_4, window_bounds = array<i64: 1, 8>}, {transform_indices = @transform_5, window_bounds = array<i64: 8, 32>}, {transform_indices = @transform_6, window_bounds = array<i64: 8, 8>}]} {
    %c0_i32 = arith.constant 0 : i32
    %0 = arith.cmpi eq, %arg1, %c0_i32 : i32
    %1 = arith.extui %0 : i1 to i32
    %c0_i32_0 = arith.constant 0 : i32
    %2 = arith.cmpi ne, %1, %c0_i32_0 : i32
    scf.if %2 {
      %cst_17 = arith.constant 0.000000e+00 : f32
      %18 = vector.broadcast %cst_17 : f32 to vector<8x8xf32>
      %c0_18 = arith.constant 0 : index
      %c0_19 = arith.constant 0 : index
      %19 = vector.load %arg9[%c0_18, %c0_19] : memref<8x8xf32, #tpu.memory_space<vmem>>, vector<8x8xf32>
      tpu.vector_store %arg9[%c0_18, %c0_19], %18 {strides = array<i32>} : memref<8x8xf32, #tpu.memory_space<vmem>>, vector<8x8xf32>,
    } else {
    }
    %c0 = arith.constant 0 : index
    %c0_1 = arith.constant 0 : index
    %3 = vector.load %arg2[%c0, %c0_1] : memref<8x16xf32, #tpu.memory_space<vmem>>, vector<8x16xf32>
    %c0_2 = arith.constant 0 : index
    %c0_3 = arith.constant 0 : index
    %4 = vector.load %arg3[%c0_2, %c0_3] : memref<16x32xf32, #tpu.memory_space<vmem>>, vector<16x32xf32>
    %cst = arith.constant dense<0.000000e+00> : vector<8x32xf32>
    %5 = tpu.matmul %3, %4, %cst {dimension_numbers = #tpu.dot_dimension_numbers<[1], [0], [0], [1], [0, 0, 1, 1], [], []>} : vector<8x16xf32>, vector<16x32xf32>, vector<8x32xf32> -> vector<8x32xf32>
    %c0_4 = arith.constant 0 : index
    %c0_5 = arith.constant 0 : index
    %6 = vector.load %arg4[%c0_4, %c0_5] : memref<1x32xf32, #tpu.memory_space<vmem>>, vector<1x32xf32>
    %7 = vector.broadcast %6 : vector<1x32xf32> to vector<8x32xf32>
    %8 = arith.addf %5, %7 : vector<8x32xf32>
    %c0_6 = arith.constant 0 : index
    %c0_7 = arith.constant 0 : index
    %9 = vector.load %arg7[%c0_6, %c0_7] : memref<8x32xf32, #tpu.memory_space<vmem>>, vector<8x32xf32>
    tpu.vector_store %arg7[%c0_6, %c0_7], %8 {strides = array<i32>} : memref<8x32xf32, #tpu.memory_space<vmem>>, vector<8x32xf32>,
    %c0_8 = arith.constant 0 : index
    %c0_9 = arith.constant 0 : index
    %10 = vector.load %arg9[%c0_8, %c0_9] : memref<8x8xf32, #tpu.memory_space<vmem>>, vector<8x8xf32>
    %c0_10 = arith.constant 0 : index
    %c0_11 = arith.constant 0 : index
    %11 = vector.load %arg5[%c0_10, %c0_11] : memref<32x8xf32, #tpu.memory_space<vmem>>, vector<32x8xf32>
    %cst_12 = arith.constant dense<0.000000e+00> : vector<8x8xf32>
    %12 = tpu.matmul %8, %11, %cst_12 {dimension_numbers = #tpu.dot_dimension_numbers<[1], [0], [0], [1], [0, 0, 1, 1], [], []>} : vector<8x32xf32>, vector<32x8xf32>, vector<8x8xf32> -> vector<8x8xf32>
    %13 = arith.addf %10, %12 : vector<8x8xf32>
    %c0_13 = arith.constant 0 : index
    %c0_14 = arith.constant 0 : index
    %14 = vector.load %arg9[%c0_13, %c0_14] : memref<8x8xf32, #tpu.memory_space<vmem>>, vector<8x8xf32>
    tpu.vector_store %arg9[%c0_13, %c0_14], %13 {strides = array<i32>} : memref<8x8xf32, #tpu.memory_space<vmem>>, vector<8x8xf32>,
    %c0_i32_15 = arith.constant 0 : i32
    %15 = arith.cmpi eq, %arg1, %c0_i32_15 : i32
    %16 = arith.extui %15 : i1 to i32
    %c0_i32_16 = arith.constant 0 : i32
    %17 = arith.cmpi ne, %16, %c0_i32_16 : i32
    scf.if %17 {
      %c0_17 = arith.constant 0 : index
      %c0_18 = arith.constant 0 : index
      %18 = vector.load %arg9[%c0_17, %c0_18] : memref<8x8xf32, #tpu.memory_space<vmem>>, vector<8x8xf32>
      %c0_19 = arith.constant 0 : index
      %c0_20 = arith.constant 0 : index
      %19 = vector.load %arg6[%c0_19, %c0_20] : memref<1x8xf32, #tpu.memory_space<vmem>>, vector<1x8xf32>
      %20 = vector.broadcast %19 : vector<1x8xf32> to vector<8x8xf32>
      %21 = arith.addf %18, %20 : vector<8x8xf32>
      %c0_21 = arith.constant 0 : index
      %c0_22 = arith.constant 0 : index
      %22 = vector.load %arg8[%c0_21, %c0_22] : memref<8x8xf32, #tpu.memory_space<vmem>>, vector<8x8xf32>
      tpu.vector_store %arg8[%c0_21, %c0_22], %21 {strides = array<i32>} : memref<8x8xf32, #tpu.memory_space<vmem>>, vector<8x8xf32>,
    } else {
    }
    return
  }
  func.func @transform_0(%arg0: i32, %arg1: i32) -> (i32, i32) {
    %c0_i32 = arith.constant 0 : i32
    %c0_i32_0 = arith.constant 0 : i32
    return %arg0, %c0_i32 : i32, i32
  }
  func.func @transform_1(%arg0: i32, %arg1: i32) -> (i32, i32) {
    %c0_i32 = arith.constant 0 : i32
    %c0_i32_0 = arith.constant 0 : i32
    return %c0_i32, %arg1 : i32, i32
  }
  func.func @transform_2(%arg0: i32, %arg1: i32) -> (i32, i32) {
    %c0_i32 = arith.constant 0 : i32
    %c0_i32_0 = arith.constant 0 : i32
    return %c0_i32, %arg1 : i32, i32
  }
  func.func @transform_3(%arg0: i32, %arg1: i32) -> (i32, i32) {
    %c0_i32 = arith.constant 0 : i32
    %c0_i32_0 = arith.constant 0 : i32
    return %arg1, %c0_i32 : i32, i32
  }
  func.func @transform_4(%arg0: i32, %arg1: i32) -> (i32, i32) {
    %c0_i32 = arith.constant 0 : i32
    %c0_i32_0 = arith.constant 0 : i32
    %c0_i32_1 = arith.constant 0 : i32
    return %c0_i32, %c0_i32_0 : i32, i32
  }
  func.func @transform_5(%arg0: i32, %arg1: i32) -> (i32, i32) {
    %c0_i32 = arith.constant 0 : i32
    return %arg0, %arg1 : i32, i32
  }
  func.func @transform_6(%arg0: i32, %arg1: i32) -> (i32, i32) {
    %c0_i32 = arith.constant 0 : i32
    %c0_i32_0 = arith.constant 0 : i32
    return %arg0, %c0_i32 : i32, i32
  }
}

</mosaic_0001>

<bundles_post_ra>
// kernel: net_forward.1
= control target key start
LH: loop header
LB: loop body
LE: loop exit
PB: predicated region body
PF: predicated region fallthrough
CT: control target
= control target key end

     0   :  { %12 = vsyncpa [#allocation4], 0  ;;  %v316_v1 = vmov 0.0   ;;  %vm317_vm0 = vmmov 0   ;;  %vm40_vm1 = vcmask 130048   ;;  %s393_s0 = inlined_call_operand.vmem [shape: f32[8,16], index: 0, kind: input, shape index: {}]   ;;  %s394_s1 = inlined_call_operand.vmem [shape: f32[16,32], index: 1, kind: input, shape index: {}]   ;;  %s395_s2 = inlined_call_operand.vmem [shape: f32[1,32], index: 2, kind: input, shape index: {}]   ;;  %s396_s3 = inlined_call_operand.vmem [shape: f32[32,8], index: 3, kind: input, shape index: {}]   ;;  %s397_s4 = inlined_call_operand.vmem [shape: f32[1,8], index: 4, kind: input, shape index: {}]   ;;  %s398_s5 = inlined_call_operand.hbm [shape: f32[8,32], index: 5, kind: output, shape index: {0}]   ;;  %s399_s6 = inlined_call_operand.hbm [shape: f32[8,8], index: 6, kind: output, shape index: {1}]  }
   0x1   :  { %v32_v0 = vld [vmem:[%s394_s1 + $0x8] sm:$0xff]  ;;  %250 = vmatprep.subr.mxu0 %v316_v1  ;;  %v31_v2 = vld [vmem:[%s394_s1] sm:$0xff]  ;;  %254 = vmatprep.mubr.msk.f32.mxu0 %vm317_vm0, %v316_v1  ;;  %v120_v3 = vld [vmem:[%s396_s3 + $0x18] sm:$0xff] }
   0x2   :  { %251 = vmatpush3.msra.mxu0 %v32_v0  ;;  %v30_v4 = vld [vmem:[%s393_s0] sm:$0xff]  ;;  %257 = vmatprep.subr.mxu1 %v316_v1  ;;  %v119_v5 = vld [vmem:[%s396_s3 + $0x10] sm:$0xff] }
   0x3   :  { %13 = vsyncpa [#allocation6], 0  ;;  %252 = vmatprep.subr.mxu0 %v316_v1  ;;  %258 = vmatpush3.msra.mxu1 %v120_v3  ;;  %v118_v6 = vld [vmem:[%s396_s3 + $0x8] sm:$0xff]  ;;  %v117_v7 = vld [vmem:[%s396_s3] sm:$0xff]  ;;  %vm28_vm2 = vcmask 64512   ;;  %vm114_vm3 = vcmask 261120  }
   0x4   :  { %253 = vmatpush3.msra.mxu0 %v31_v2  ;;  %259 = vmatprep.subr.mxu1 %v316_v1  ;;  %29 = vst.msk [vmem:[#allocation2] sm:$0xff] %vm28_vm2, %v316_v1  ;;  %v238_v8 = vld [vmem:[%s395_s2] ss:$0 sm:$0xff]  ;;  %s318_s11 = smov [#allocation3]  }
   0x5   :  { %255 = vmatmul.mubr.msk.f32.vlgmr.msra.gmra.mxu0 %vm40_vm1, %v30_v4  ;;  %260 = vmatpush3.msra.mxu1 %v119_v5  ;;  %s216_s12 = sshll.u32 %s318_s11, 4  ;;  %s217_s12 = int_to_ptr.vmem [resolvable:$true] %s216_s12 }
   0x6   :  { %261 = vmatprep.subr.mxu1 %v316_v1  ;;  %265 = vmatprep.mubr.msk.f32.mxu1 %vm317_vm0, %v316_v1  ;;  %s272_s13 = scalar_lea.vmem %s217_s12, 128  ;;  %p277_p1 = scmp.lt.s32.totalorder %s217_s12, %s217_s12 }
   0x7   :  { %262 = vmatpush3.msra.mxu1 %v118_v6  ;;  %p273_p0 = scmp.ne.s32.totalorder %s217_s12, %s272_s13  ;;  %p278_p2 = scmp.lt.s32.totalorder %s272_s13, %s272_s13 }
   0x8   :  { %263 = vmatprep.subr.mxu1 %v316_v1 }
   0x9   :  { %264 = vmatpush3.msra.mxu1 %v117_v7  ;;  %p279_p3 = por %p278_p2, %p277_p1 }
   0xb   :  { %p280_p4 = pnand %p279_p3, %p273_p0 }
  0xc5   :  { %v110_v9 = vpop.f32.mrf.mxu0 }
  0xc6   :  { %v111_v10 = vadd.f32 %v238_v8, %v110_v9 }
  0xc7   :  { %v256_v11 = vpop.f32.mrf.mxu0 }
  0xc8   :  { %266 = vmatmul.mubr.msk.f32.vlgmr.msra.gmra.mxu1 %vm114_vm3, %v111_v10  ;;  %115 = vst.msk [vmem:[#allocation3] sm:$0xff] %vm114_vm3, %v111_v10 }
  0xc9   :  { %283 = shalt.err (!%p280_p4)
}
  0xca   :  { %219 = dma.vmem_to_hbm [thread:$0]  %s217_s12, 128, %s398_s5, [#allocation4]   ;;  %v116_v12 = vld [vmem:[#allocation2] sm:$0xff] }
  0xcb   :  { %v241_v16 = vld [vmem:[%s397_s4] ss:$0 sm:$0xff]  ;;  %s319_s16 = smov [#allocation5]  }
  0xcc   :  { %s226_s17 = sshll.u32 %s319_s16, 4  ;;  %s227_s17 = int_to_ptr.vmem [resolvable:$true] %s226_s17 }
  0xcd   :  { %s292_s18 = scalar_lea.vmem %s227_s17, 128  ;;  %p297_p6 = scmp.lt.s32.totalorder %s227_s17, %s227_s17 }
  0xce   :  { %p293_p5 = scmp.ne.s32.totalorder %s227_s17, %s292_s18  ;;  %p298_p7 = scmp.lt.s32.totalorder %s292_s18, %s292_s18 }
  0xd0   :  { %p299_p8 = por %p298_p7, %p297_p6 }
  0xd2   :  { %p300_p9 = pnand %p299_p8, %p293_p5 }
 0x188   :  { %v190_v13 = vpop.f32.mrf.mxu1 }
 0x189   :  { %v194_v14 = vadd.f32 %v190_v13, %v116_v12 }
 0x18a   :  { %v267_v15 = vpop.f32.mrf.mxu1 }
 0x18b   :  { %196 = vst.msk [vmem:[#allocation2] sm:$0xff] %vm28_vm2, %v194_v14 }
 0x192   :  { %v200_v17 = vld [vmem:[#allocation2] sm:$0xff] }
 0x193   :  { %v208_v18 = vadd.f32 %v241_v16, %v200_v17 }
 0x195   :  { %209 = vst.msk [vmem:[#allocation5] sm:$0xff] %vm28_vm2, %v208_v18 }
 0x196   :  { %303 = shalt.err (!%p300_p9)
}
 0x197   :  { %229 = dma.vmem_to_hbm [thread:$0]  %s227_s17, 128, %s399_s6, [#allocation6]  }
 0x198   :  { %312 = dma.done.wait [#allocation4], 128  }
 0x199   :  { %313 = vsyncadd [#allocation4], 4294967168 }
 0x19a   :  { %314 = dma.done.wait [#allocation6], 128  }
 0x19b   :  { %315 = vsyncadd [#allocation6], 4294967168 }
 0x19c   :  { %236 = vsyncpa [#allocation4], 1 }
 0x19d   :  { %237 = vsyncpa [#allocation6], 1 }

</bundles_post_ra>
